<compile_context>
chip_gen: v5e
topology: v5e:2x2
jax: 0.10.0
libtpu: 0.0.40
codegen_flags: <defaults>
</compile_context>

<pallas_src>
import functools

import jax
import jax.numpy as jnp
from jax import lax
from jax.experimental import pallas as pl
from jax.experimental.pallas import tpu as pltpu

EPS = 1e-6


def _round_up(x, m):
    return ((x + m - 1) // m) * m


def _pick_row_tile(R, N_pad, itemsize, sublane):
    # ~2 MiB per x tile: double-buffered (x + out) stays < ~10 MiB, which fits
    # every generation's scoped VMEM (v5e 16 MiB default, v7x 64 MiB physical).
    target_bytes = 2 << 20
    tr = max(1, target_bytes // (N_pad * itemsize))
    tr = max(sublane, (tr // sublane) * sublane)
    # Keep at least 2 grid steps when there are enough rows (v7x megacore
    # split + pipeline overlap).
    if R >= 2 * sublane:
        half = _round_up(pl.cdiv(R, 2), sublane)
        tr = min(tr, half)
    # Never exceed the (padded) total row count.
    tr = min(tr, _round_up(R, sublane))
    return tr


def _frn_kernel(x_ref, w_ref, b_ref, o_ref, *, eps, inv_n, tr):
    # x_ref: (tr, N_pad) tile; w_ref/b_ref: resident (R_pad, 1) params.
    i = pl.program_id(0)
    r0 = pl.multiple_of(i * tr, 8)

    x = x_ref[...].astype(jnp.float32)
    # nu2 = mean(x^2) over true spatial size N (zero padding contributes 0).
    nu2 = jnp.sum(x * x, axis=-1, keepdims=True) * inv_n          # (tr, 1)

    w = w_ref[pl.ds(r0, tr), :].astype(jnp.float32)               # (tr, 1)
    b = b_ref[pl.ds(r0, tr), :].astype(jnp.float32)               # (tr, 1)

    # Fold the affine scale into the rsqrt (one per-row mul instead of a
    # full-width per-element mul).
    scale = w * lax.rsqrt(nu2 + eps)                              # (tr, 1)
    o_ref[...] = (x * scale + b).astype(o_ref.dtype)


def frn_forward(x, weight, bias, eps=EPS, row_tile=None):
    """x: (B, C, H, W); weight/bias: (1, C, 1, 1). Returns (B, C, H, W)."""
    B, C, H, W = x.shape
    R = B * C
    N = H * W

    itemsize = jnp.dtype(x.dtype).itemsize
    sublane = max(8, 32 // itemsize)      # 8 for f32, 16 for bf16, 32 for int8

    # Lane-dense padding of the spatial axis.
    N_pad = _round_up(N, 128)

    if row_tile is None:
        tr = _pick_row_tile(R, N_pad, itemsize, sublane)
    else:
        tr = _round_up(min(int(row_tile), max(R, 1)), sublane)

    grid = pl.cdiv(R, tr)
    R_pad = grid * tr

    # TODO(synk): megapixel spatial sizes (tr_min * N_pad * itemsize > ~48 MiB)
    # would need a second grid axis over N with a sum-of-squares accumulator;
    # not needed for typical conv feature maps.

    x2d = x.reshape(R, N)
    if N_pad != N:
        x2d = jnp.pad(x2d, ((0, 0), (0, N_pad - N)))
    if R_pad != R:
        x2d = jnp.pad(x2d, ((0, R_pad - R), (0, 0)))

    # Per-row params (B*C, 1), resident in VMEM for the whole kernel.
    w_row = jnp.broadcast_to(weight.reshape(1, C), (B, C)).reshape(R, 1)
    b_row = jnp.broadcast_to(bias.reshape(1, C), (B, C)).reshape(R, 1)
    w_row = w_row.astype(jnp.float32)
    b_row = b_row.astype(jnp.float32)
    if R_pad != R:
        w_row = jnp.pad(w_row, ((0, R_pad - R), (0, 0)))
        b_row = jnp.pad(b_row, ((0, R_pad - R), (0, 0)))

    kernel = functools.partial(
        _frn_kernel, eps=float(eps), inv_n=1.0 / float(N), tr=tr
    )

    # VMEM budget: double-buffered x + out tiles, resident params, margin.
    tile_bytes = tr * N_pad * itemsize
    param_bytes = R_pad * 4
    vmem_need = 4 * tile_bytes + 4 * param_bytes + (2 << 20)
    vmem_limit = int(min(max(vmem_need, 16 << 20), 48 << 20))

    cost = pl.CostEstimate(
        flops=4 * R * N,
        transcendentals=R,
        bytes_accessed=2 * R * N * itemsize + 2 * R * 4,
    )

    out2d = pl.pallas_call(
        kernel,
        out_shape=jax.ShapeDtypeStruct((R_pad, N_pad), x.dtype),
        grid_spec=pltpu.PrefetchScalarGridSpec(
            num_scalar_prefetch=0,
            grid=(grid,),
            in_specs=[
                pl.BlockSpec((tr, N_pad), lambda i: (i, 0)),
                pl.BlockSpec((R_pad, 1), lambda i: (0, 0)),   # resident weight
                pl.BlockSpec((R_pad, 1), lambda i: (0, 0)),   # resident bias
            ],
            out_specs=pl.BlockSpec((tr, N_pad), lambda i: (i, 0)),
        ),
        compiler_params=pltpu.CompilerParams(
            dimension_semantics=("parallel",),
            vmem_limit_bytes=vmem_limit,
        ),
        cost_estimate=cost,
    )(x2d, w_row, b_row)

    out2d = out2d[:R, :N]
    return out2d.reshape(B, C, H, W)


def frn_reference(x, weight, bias, eps=EPS):
    nu2 = jnp.mean(x.astype(jnp.float32) ** 2, axis=(2, 3), keepdims=True)
    x_hat = x.astype(jnp.float32) * lax.rsqrt(nu2 + eps)
    return (weight * x_hat + bias).astype(x.dtype)


if __name__ == "__main__":
    B, C, H, W = 2, 4, 16, 16
    key = jax.random.PRNGKey(0)
    x = jax.random.normal(key, (B, C, H, W), dtype=jnp.float32)

    # Deterministic parameter init per FRN.reset_parameters():
    # weight = ones, bias = zeros, shapes (1, C, 1, 1).
    weight = jnp.ones((1, C, 1, 1), dtype=jnp.float32)
    bias = jnp.zeros((1, C, 1, 1), dtype=jnp.float32)

    out = frn_forward(x, weight, bias)
    out = jax.block_until_ready(out)

    ref = frn_reference(x, weight, bias)
    assert out.shape == (B, C, H, W)
    assert jnp.allclose(out, ref, atol=1e-5, rtol=1e-5), "mismatch vs reference"

    print("KERNEL_OK")
</pallas_src>

<mosaic_0001>
module attributes {stable_mosaic.version = 11 : i64} {
  func.func @_frn_kernel(%arg0: i32, %arg1: memref<8x256xf32, #tpu.memory_space<vmem>>, %arg2: memref<8x1xf32, #tpu.memory_space<vmem>>, %arg3: memref<8x1xf32, #tpu.memory_space<vmem>>, %arg4: memref<8x256xf32, #tpu.memory_space<vmem>>) attributes {dimension_semantics = [#tpu.dimension_semantics<parallel>], iteration_bounds = array<i64: 1>, scalar_prefetch = 0 : i64, scratch_operands = 0 : i64, tpu.core_type = #tpu.core_type<tc>, window_params = [{transform_indices = @transform_0, window_bounds = array<i64: 8, 256>}, {pipeline_mode = #tpu.pipeline_mode<synchronous>, transform_indices = @transform_1, window_bounds = array<i64: 8, 1>}, {pipeline_mode = #tpu.pipeline_mode<synchronous>, transform_indices = @transform_2, window_bounds = array<i64: 8, 1>}, {transform_indices = @transform_3, window_bounds = array<i64: 8, 256>}]} {
    %c8_i32 = arith.constant 8 : i32
    %0 = arith.muli %arg0, %c8_i32 : i32
    %1 = tpu.assume_multiple %0, 8 : i32
    %c0 = arith.constant 0 : index
    %c0_0 = arith.constant 0 : index
    %2 = vector.load %arg1[%c0, %c0_0] : memref<8x256xf32, #tpu.memory_space<vmem>>, vector<8x256xf32>
    %3 = arith.mulf %2, %2 : vector<8x256xf32>
    %cst = arith.constant dense<0.000000e+00> : vector<8xf32>
    %4 = vector.multi_reduction <add>, %3, %cst [1] : vector<8x256xf32> to vector<8xf32>
    %5 = vector.shape_cast %4 : vector<8xf32> to vector<8x1xf32>
    %cst_1 = arith.constant 3.906250e-03 : f32
    %6 = vector.broadcast %cst_1 : f32 to vector<8x1xf32>
    %7 = arith.mulf %5, %6 : vector<8x1xf32>
    %8 = arith.index_cast %1 : i32 to index
    %c0_2 = arith.constant 0 : index
    %9 = vector.load %arg2[%8, %c0_2] : memref<8x1xf32, #tpu.memory_space<vmem>>, vector<8x1xf32>
    %10 = arith.index_cast %1 : i32 to index
    %c0_3 = arith.constant 0 : index
    %11 = vector.load %arg3[%10, %c0_3] : memref<8x1xf32, #tpu.memory_space<vmem>>, vector<8x1xf32>
    %cst_4 = arith.constant 9.99999997E-7 : f32
    %12 = vector.broadcast %cst_4 : f32 to vector<8x1xf32>
    %13 = arith.addf %7, %12 : vector<8x1xf32>
    %14 = math.rsqrt %13 : vector<8x1xf32>
    %15 = arith.mulf %9, %14 : vector<8x1xf32>
    %16 = vector.broadcast %15 : vector<8x1xf32> to vector<8x256xf32>
    %17 = arith.mulf %2, %16 : vector<8x256xf32>
    %18 = vector.broadcast %11 : vector<8x1xf32> to vector<8x256xf32>
    %19 = arith.addf %17, %18 : vector<8x256xf32>
    %c0_5 = arith.constant 0 : index
    %c0_6 = arith.constant 0 : index
    %20 = vector.load %arg4[%c0_5, %c0_6] : memref<8x256xf32, #tpu.memory_space<vmem>>, vector<8x256xf32>
    tpu.vector_store %arg4[%c0_5, %c0_6], %19 {strides = array<i32>} : memref<8x256xf32, #tpu.memory_space<vmem>>, vector<8x256xf32>,
    return
  }
  func.func @transform_0(%arg0: i32) -> (i32, i32) {
    %c0_i32 = arith.constant 0 : i32
    %c0_i32_0 = arith.constant 0 : i32
    return %arg0, %c0_i32 : i32, i32
  }
  func.func @transform_1(%arg0: i32) -> (i32, i32) {
    %c0_i32 = arith.constant 0 : i32
    %c0_i32_0 = arith.constant 0 : i32
    %c0_i32_1 = arith.constant 0 : i32
    return %c0_i32, %c0_i32_0 : i32, i32
  }
  func.func @transform_2(%arg0: i32) -> (i32, i32) {
    %c0_i32 = arith.constant 0 : i32
    %c0_i32_0 = arith.constant 0 : i32
    %c0_i32_1 = arith.constant 0 : i32
    return %c0_i32, %c0_i32_0 : i32, i32
  }
  func.func @transform_3(%arg0: i32) -> (i32, i32) {
    %c0_i32 = arith.constant 0 : i32
    %c0_i32_0 = arith.constant 0 : i32
    return %arg0, %c0_i32 : i32, i32
  }
}

</mosaic_0001>

<bundles_post_ra>
// kernel: tpu_custom_call.1
= control target key start
LH: loop header
LB: loop body
LE: loop exit
PB: predicated region body
PF: predicated region fallthrough
CT: control target
= control target key end

     0   :  { %s141_s0 = inlined_call_operand.vmem [shape: f32[8,256], index: 0, kind: input, shape index: {}]   ;;  %s142_s1 = inlined_call_operand.vmem [shape: f32[8,1], index: 1, kind: input, shape index: {}]   ;;  %s143_s2 = inlined_call_operand.vmem [shape: f32[8,1], index: 2, kind: input, shape index: {}]   ;;  %s144_s3 = inlined_call_operand.hbm [shape: f32[8,256], index: 3, kind: output, shape index: {}]  }
   0x1   :  { %v16_v0 = vld [vmem:[%s141_s0] sm:$0xff]  ;;  %v17_v1 = vld [vmem:[%s141_s0 + $0x8] sm:$0xff] }
   0x2   :  { %8 = vsyncpa [#allocation3], 0  ;;  %v18_v2 = vmul.f32 %v16_v0, %v16_v0  ;;  %v19_v3 = vmul.f32 %v17_v1, %v17_v1  ;;  %v104_v5 = vmov 0   ;;  %v27_v6 = vld [vmem:[%s143_s2] sm:$0xff]  ;;  %s105_s2 = smov [#allocation2]   ;;  %s63_s22 = sshll.u32 %s144_s3, 4  ;;  %s64_s22 = int_to_ptr.hbm [resolvable:$true] %s63_s22 }
   0x3   :  { %74 = vset.pattern.permute.xlu0 %v104_v5  ;;  %75 = vset.pattern.permute.xlu1 %v104_v5  ;;  %v25_v15 = vld [vmem:[%s142_s1] sm:$0xff]  ;;  %s61_s19 = sshll.u32 %s105_s2, 4  ;;  %s62_s19 = int_to_ptr.vmem [resolvable:$true] %s61_s19 }
   0x4   :  { %v20_v4 = vadd.f32 %v19_v3, %v18_v2  ;;  %49 = vperm.xlu1 %75, %v27_v6  }
   0x6   :  { %21 = vadd.xlane.f32.xlu0 %v20_v4 }
  0x76   :  { %v50_v20 = vpop.permute.xlu1 %49 }
  0x79   :  { %v22_v7 = vpop.xlane.xlu0 %21 }
  0x7a   :  { %v23_v8 = vmul.f32 0.00390625, %v22_v7 }
  0x7c   :  { %v28_v9 = vadd.f32 1e-06, %v23_v8 }
  0x7e   :  { %76 = vrsqrt.f32 %v28_v9  ;;  %vm35_vm1 = vweird.f32 %v28_v9 }
  0x84   :  { %v77_v10 = vpop.eup %76 }
  0x85   :  { %v30_v11 = vmul.f32 %v77_v10, %v28_v9  ;;  %vm36_vm0 = vweird.f32 %v77_v10 }
  0x86   :  { %vm37_vm2 = vmor %vm35_vm1, %vm36_vm0 }
  0x87   :  { %v31_v12 = vmul.f32 %v77_v10, %v30_v11 }
  0x89   :  { %v32_v13 = vmul.f32 0.5, %v31_v12 }
  0x8b   :  { %v33_v14 = vsub.f32 1.5, %v32_v13 }
  0x8d   :  { %v34_v16 = vmul.f32 %v77_v10, %v33_v14 }
  0x8f   :  { %v38_v17 = vsel %vm37_vm2, %v77_v10, %v34_v16 }
  0x90   :  { %v39_v18 = vmul.f32 %v38_v17, %v25_v15 }
  0x92   :  { %42 = vperm.xlu0 %74, %v39_v18  }
 0x104   :  { %v43_v19 = vpop.permute.xlu0 %42 }
 0x105   :  { %v45_v21 = vmul.f32 %v43_v19, %v16_v0  ;;  %v46_v22 = vmul.f32 %v43_v19, %v17_v1 }
 0x107   :  { %v52_v23 = vadd.f32 %v50_v20, %v45_v21  ;;  %v53_v24 = vadd.f32 %v50_v20, %v46_v22 }
 0x109   :  { %54 = vst [vmem:[#allocation2] sm:$0xff] %v52_v23 }
 0x10a   :  { %55 = vst [vmem:[#allocation2 + $0x8] sm:$0xff] %v53_v24 }
 0x10b   :  { %66 = dma.vmem_to_hbm [thread:$0]  %s62_s19, 256, %s64_s22, [#allocation3]  }
 0x10c   :  { %102 = dma.done.wait [#allocation3], 256  }
 0x10d   :  { %103 = vsyncadd [#allocation3], 4294967040 }
 0x10e   :  { %71 = vsyncpa [#allocation3], 1 }

</bundles_post_ra>
